<compile_context>
chip_gen: v5e
topology: v5e:2x2
jax: 0.10.0
libtpu: 0.0.40
codegen_flags: <defaults>
</compile_context>

<pallas_src>
import functools

import jax
import jax.numpy as jnp
from jax.experimental import pallas as pl
from jax.experimental.pallas import tpu as pltpu


def _round_up(v, m):
    return (v + m - 1) // m * m


def _make_naop_kernel(tm, fop, fused):
    """tm: output row tile; fop: padded out_dim (multiple of 128);
    fused: True when the grid has a single step (whole graph in one block)."""

    def kernel(a_ref, x_ref, dinv_ref, wcat_ref, b_ref, o_ref):
        # a_ref    : (tm, Np)        bf16  rows of (A + I), un-normalized
        # x_ref    : (Np, Fin_p)     bf16  full node features (resident)
        # dinv_ref : (Np, 1)         f32   D^-1/2 per node (resident)
        # wcat_ref : (Fin_p, 2*fop)  bf16  [W | W_lin]
        # b_ref    : (1, fop)        f32   b + b_lin
        # o_ref    : (tm, fop)       f32
        i = pl.program_id(0)
        row0 = pl.multiple_of(i * tm, 8)

        if fused:
            # Single grid step: one MXU pass over the concatenated weights.
            xwl = jnp.dot(x_ref[...], wcat_ref[...],
                          preferred_element_type=jnp.float32)
            xw_f32 = xwl[:, :fop]          # GCN branch: x @ W   (all rows)
            lin = xwl[:, fop:]             # linear branch: x @ W_lin
        else:
            # Row-tiled: the aggregation needs x @ W for ALL rows, the linear
            # branch only for this output block's rows.
            xw_f32 = jnp.dot(x_ref[...], wcat_ref[:, :fop],
                             preferred_element_type=jnp.float32)
            lin = jnp.dot(x_ref[pl.ds(row0, tm), :], wcat_ref[:, fop:],
                          preferred_element_type=jnp.float32)

        # Symmetric normalization folded in (f32), then bf16 for the A-matmul.
        # Note: A_hat @ (xW) association is optimal here since F_out <= F_in;
        # switch to (A_hat @ x) @ W if F_out > F_in.
        xw = (xw_f32 * dinv_ref[...]).astype(jnp.bfloat16)   # source-side D^-1/2
        agg = jnp.dot(a_ref[...], xw, preferred_element_type=jnp.float32)
        agg = agg * dinv_ref[pl.ds(row0, tm), :]              # dest-side D^-1/2

        o_ref[...] = jnp.maximum(agg + lin + b_ref[...], 0.0)

    return kernel


def naop_forward(x, edge_index, w, b, w_lin, b_lin, *, row_tile=256):
    """x: [N, F_in] f32, edge_index: [2, E] int32 (directed edges src->dst)."""
    n, f_in = x.shape
    f_out = w.shape[1]

    # ---- glue: adjacency with self loops + D^-1/2 (kept in f32) ----
    src, dst = edge_index[0], edge_index[1]
    adj = jnp.zeros((n, n), jnp.float32).at[dst, src].set(1.0)
    adj = adj + jnp.eye(n, dtype=jnp.float32)                 # add self loops
    deg = adj.sum(axis=1)
    dinv = jnp.where(deg > 0, jax.lax.rsqrt(deg), 0.0)

    # ---- lane-dense padding: features -> x128, rows -> row-tile multiple ----
    f_in_p = _round_up(f_in, 128)
    f_out_p = _round_up(f_out, 128)
    tm = min(row_tile, _round_up(n, 8))
    n_p = _round_up(n, tm)
    grid_m = n_p // tm

    x_p = jnp.zeros((n_p, f_in_p), jnp.bfloat16).at[:n, :f_in].set(
        x.astype(jnp.bfloat16))
    adj_p = jnp.zeros((n_p, n_p), jnp.bfloat16).at[:n, :n].set(
        adj.astype(jnp.bfloat16))                             # 0/1 entries: exact in bf16
    dinv_p = jnp.zeros((n_p, 1), jnp.float32).at[:n, 0].set(dinv)

    # fused weights [W | W_lin] (bf16) and pre-summed bias (f32)
    wcat = jnp.zeros((f_in_p, 2 * f_out_p), jnp.bfloat16)
    wcat = wcat.at[:f_in, :f_out].set(w.astype(jnp.bfloat16))
    wcat = wcat.at[:f_in, f_out_p:f_out_p + f_out].set(w_lin.astype(jnp.bfloat16))
    b_tot = jnp.zeros((1, f_out_p), jnp.float32).at[0, :f_out].set(b + b_lin)

    kernel = _make_naop_kernel(tm, f_out_p, fused=(grid_m == 1))

    out_p = pl.pallas_call(
        kernel,
        out_shape=jax.ShapeDtypeStruct((n_p, f_out_p), jnp.float32),
        grid_spec=pltpu.PrefetchScalarGridSpec(
            num_scalar_prefetch=0,
            grid=(grid_m,),
            in_specs=[
                pl.BlockSpec((tm, n_p), lambda i: (i, 0)),              # adj rows
                pl.BlockSpec((n_p, f_in_p), lambda i: (0, 0)),          # x (resident)
                pl.BlockSpec((n_p, 1), lambda i: (0, 0)),               # dinv (resident)
                pl.BlockSpec((f_in_p, 2 * f_out_p), lambda i: (0, 0)),  # [W | W_lin]
                pl.BlockSpec((1, f_out_p), lambda i: (0, 0)),           # b + b_lin
            ],
            out_specs=pl.BlockSpec((tm, f_out_p), lambda i: (i, 0)),
        ),
        compiler_params=pltpu.CompilerParams(
            dimension_semantics=("parallel",),
            # leave headroom under v7x's 64 MiB physical VMEM
            vmem_limit_bytes=48 << 20,
        ),
    )(adj_p, x_p, dinv_p, wcat, b_tot)

    return out_p[:n, :f_out]


def reference_forward(x, edge_index, w, b, w_lin, b_lin):
    n = x.shape[0]
    src, dst = edge_index[0], edge_index[1]
    adj = jnp.zeros((n, n), jnp.float32).at[dst, src].set(1.0)
    adj = adj + jnp.eye(n, dtype=jnp.float32)
    deg = adj.sum(axis=1)
    dinv = jnp.where(deg > 0, jax.lax.rsqrt(deg), 0.0)
    a_hat = adj * dinv[:, None] * dinv[None, :]
    gcn = a_hat @ (x @ w) + b
    lin = x @ w_lin + b_lin
    return jnp.maximum(gcn + lin, 0.0)


def _ring_graph(n):
    src = jnp.arange(n, dtype=jnp.int32)
    dst = (src + 1) % n
    return jnp.stack(
        [jnp.concatenate([src, dst]), jnp.concatenate([dst, src])], axis=0)


if __name__ == "__main__":
    key = jax.random.PRNGKey(0)
    k_x, k_w, k_b, k_wl, k_bl, k_x2 = jax.random.split(key, 6)

    IN_DIM, OUT_DIM = 32, 32
    w = jax.random.normal(k_w, (IN_DIM, OUT_DIM), jnp.float32) * 0.1
    b = jax.random.normal(k_b, (OUT_DIM,), jnp.float32) * 0.1
    w_lin = jax.random.normal(k_wl, (IN_DIM, OUT_DIM), jnp.float32) * 0.1
    b_lin = jax.random.normal(k_bl, (OUT_DIM,), jnp.float32) * 0.1

    # bf16 MXU inputs with f32 accumulation -> relaxed tolerance vs f32 reference.
    ATOL = RTOL = 5e-2

    # Case 1: small graph, single fused grid step (N=16).
    N1 = 16
    x1 = jax.random.normal(k_x, (N1, IN_DIM), jnp.float32)
    e1 = _ring_graph(N1)
    out1 = jax.block_until_ready(naop_forward(x1, e1, w, b, w_lin, b_lin))
    ref1 = reference_forward(x1, e1, w, b, w_lin, b_lin)
    assert out1.shape == (N1, OUT_DIM)
    assert jnp.allclose(out1, ref1, atol=ATOL, rtol=RTOL)

    # Case 2: exercise the row-tiled (multi-step, parallel) grid path.
    N2 = 40
    x2 = jax.random.normal(k_x2, (N2, IN_DIM), jnp.float32)
    e2 = _ring_graph(N2)
    out2 = jax.block_until_ready(
        naop_forward(x2, e2, w, b, w_lin, b_lin, row_tile=16))
    ref2 = reference_forward(x2, e2, w, b, w_lin, b_lin)
    assert out2.shape == (N2, OUT_DIM)
    assert jnp.allclose(out2, ref2, atol=ATOL, rtol=RTOL)

    print("KERNEL_OK")
</pallas_src>

<mosaic_0001>
module attributes {stable_mosaic.version = 11 : i64} {
  func.func @kernel(%arg0: i32, %arg1: memref<16x16xbf16, #tpu.memory_space<vmem>>, %arg2: memref<16x128xbf16, #tpu.memory_space<vmem>>, %arg3: memref<16x1xf32, #tpu.memory_space<vmem>>, %arg4: memref<128x256xbf16, #tpu.memory_space<vmem>>, %arg5: memref<1x128xf32, #tpu.memory_space<vmem>>, %arg6: memref<16x128xf32, #tpu.memory_space<vmem>>) attributes {dimension_semantics = [#tpu.dimension_semantics<parallel>], iteration_bounds = array<i64: 1>, scalar_prefetch = 0 : i64, scratch_operands = 0 : i64, tpu.core_type = #tpu.core_type<tc>, window_params = [{transform_indices = @transform_0, window_bounds = array<i64: 16, 16>}, {pipeline_mode = #tpu.pipeline_mode<synchronous>, transform_indices = @transform_1, window_bounds = array<i64: 16, 128>}, {pipeline_mode = #tpu.pipeline_mode<synchronous>, transform_indices = @transform_2, window_bounds = array<i64: 16, 1>}, {pipeline_mode = #tpu.pipeline_mode<synchronous>, transform_indices = @transform_3, window_bounds = array<i64: 128, 256>}, {pipeline_mode = #tpu.pipeline_mode<synchronous>, transform_indices = @transform_4, window_bounds = array<i64: 1, 128>}, {transform_indices = @transform_5, window_bounds = array<i64: 16, 128>}]} {
    %c16_i32 = arith.constant 16 : i32
    %0 = arith.muli %arg0, %c16_i32 : i32
    %1 = tpu.assume_multiple %0, 8 : i32
    %c0 = arith.constant 0 : index
    %c0_0 = arith.constant 0 : index
    %2 = vector.load %arg2[%c0, %c0_0] : memref<16x128xbf16, #tpu.memory_space<vmem>>, vector<16x128xbf16>
    %c0_1 = arith.constant 0 : index
    %c0_2 = arith.constant 0 : index
    %3 = vector.load %arg4[%c0_1, %c0_2] : memref<128x256xbf16, #tpu.memory_space<vmem>>, vector<128x256xbf16>
    %cst = arith.constant dense<0.000000e+00> : vector<16x256xf32>
    %4 = tpu.matmul %2, %3, %cst {dimension_numbers = #tpu.dot_dimension_numbers<[1], [0], [0], [1], [0, 0, 1, 1], [], []>} : vector<16x128xbf16>, vector<128x256xbf16>, vector<16x256xf32> -> vector<16x256xf32>
    %5 = vector.extract_strided_slice %4 {offsets = [0, 0], sizes = [16, 128], strides = [1, 1]} : vector<16x256xf32> to vector<16x128xf32>
    %6 = vector.extract_strided_slice %4 {offsets = [0, 128], sizes = [16, 128], strides = [1, 1]} : vector<16x256xf32> to vector<16x128xf32>
    %c0_3 = arith.constant 0 : index
    %c0_4 = arith.constant 0 : index
    %7 = vector.load %arg3[%c0_3, %c0_4] : memref<16x1xf32, #tpu.memory_space<vmem>>, vector<16x1xf32>
    %8 = vector.broadcast %7 : vector<16x1xf32> to vector<16x128xf32>
    %9 = arith.mulf %5, %8 : vector<16x128xf32>
    %10 = arith.truncf %9 : vector<16x128xf32> to vector<16x128xbf16>
    %c0_5 = arith.constant 0 : index
    %c0_6 = arith.constant 0 : index
    %11 = vector.load %arg1[%c0_5, %c0_6] : memref<16x16xbf16, #tpu.memory_space<vmem>>, vector<16x16xbf16>
    %cst_7 = arith.constant dense<0.000000e+00> : vector<16x128xf32>
    %12 = tpu.matmul %11, %10, %cst_7 {dimension_numbers = #tpu.dot_dimension_numbers<[1], [0], [0], [1], [0, 0, 1, 1], [], []>} : vector<16x16xbf16>, vector<16x128xbf16>, vector<16x128xf32> -> vector<16x128xf32>
    %13 = arith.index_cast %1 : i32 to index
    %c0_8 = arith.constant 0 : index
    %14 = vector.load %arg3[%13, %c0_8] : memref<16x1xf32, #tpu.memory_space<vmem>>, vector<16x1xf32>
    %15 = vector.broadcast %14 : vector<16x1xf32> to vector<16x128xf32>
    %16 = arith.mulf %12, %15 : vector<16x128xf32>
    %17 = arith.addf %16, %6 : vector<16x128xf32>
    %c0_9 = arith.constant 0 : index
    %c0_10 = arith.constant 0 : index
    %18 = vector.load %arg5[%c0_9, %c0_10] : memref<1x128xf32, #tpu.memory_space<vmem>>, vector<1x128xf32>
    %19 = vector.broadcast %18 : vector<1x128xf32> to vector<16x128xf32>
    %20 = arith.addf %17, %19 : vector<16x128xf32>
    %cst_11 = arith.constant 0.000000e+00 : f32
    %21 = vector.broadcast %cst_11 : f32 to vector<16x128xf32>
    %22 = arith.maximumf %20, %21 : vector<16x128xf32>
    %c0_12 = arith.constant 0 : index
    %c0_13 = arith.constant 0 : index
    %23 = vector.load %arg6[%c0_12, %c0_13] : memref<16x128xf32, #tpu.memory_space<vmem>>, vector<16x128xf32>
    tpu.vector_store %arg6[%c0_12, %c0_13], %22 {strides = array<i32>} : memref<16x128xf32, #tpu.memory_space<vmem>>, vector<16x128xf32>,
    return
  }
  func.func @transform_0(%arg0: i32) -> (i32, i32) {
    %c0_i32 = arith.constant 0 : i32
    %c0_i32_0 = arith.constant 0 : i32
    return %arg0, %c0_i32 : i32, i32
  }
  func.func @transform_1(%arg0: i32) -> (i32, i32) {
    %c0_i32 = arith.constant 0 : i32
    %c0_i32_0 = arith.constant 0 : i32
    %c0_i32_1 = arith.constant 0 : i32
    return %c0_i32, %c0_i32_0 : i32, i32
  }
  func.func @transform_2(%arg0: i32) -> (i32, i32) {
    %c0_i32 = arith.constant 0 : i32
    %c0_i32_0 = arith.constant 0 : i32
    %c0_i32_1 = arith.constant 0 : i32
    return %c0_i32, %c0_i32_0 : i32, i32
  }
  func.func @transform_3(%arg0: i32) -> (i32, i32) {
    %c0_i32 = arith.constant 0 : i32
    %c0_i32_0 = arith.constant 0 : i32
    %c0_i32_1 = arith.constant 0 : i32
    return %c0_i32, %c0_i32_0 : i32, i32
  }
  func.func @transform_4(%arg0: i32) -> (i32, i32) {
    %c0_i32 = arith.constant 0 : i32
    %c0_i32_0 = arith.constant 0 : i32
    %c0_i32_1 = arith.constant 0 : i32
    return %c0_i32, %c0_i32_0 : i32, i32
  }
  func.func @transform_5(%arg0: i32) -> (i32, i32) {
    %c0_i32 = arith.constant 0 : i32
    %c0_i32_0 = arith.constant 0 : i32
    return %arg0, %c0_i32 : i32, i32
  }
}

</mosaic_0001>

<bundles_post_ra>
// kernel: tpu_custom_call.1
= control target key start
LH: loop header
LB: loop body
LE: loop exit
PB: predicated region body
PF: predicated region fallthrough
CT: control target
= control target key end

     0   :  { %10 = vsyncpa [#allocation3], 0  ;;  %s470_s0 = inlined_call_operand.vmem [shape: bf16[16,16], index: 0, kind: input, shape index: {}]   ;;  %s471_s1 = inlined_call_operand.vmem [shape: bf16[16,128], index: 1, kind: input, shape index: {}]   ;;  %s472_s2 = inlined_call_operand.vmem [shape: f32[16,1], index: 2, kind: input, shape index: {}]   ;;  %s473_s3 = inlined_call_operand.hbm [shape: bf16[128,256], index: 3, kind: input, shape index: {}]   ;;  %s474_s4 = inlined_call_operand.vmem [shape: f32[1,128], index: 4, kind: input, shape index: {}]   ;;  %s475_s5 = inlined_call_operand.hbm [shape: f32[16,128], index: 5, kind: output, shape index: {}]  }
   0x1   :  { %11 = vsyncpa [#allocation4], 0  ;;  %s22_s20 = sshll.u32 %s473_s3, 4  ;;  %s408_s21 = smov [#allocation2]   ;;  %s23_s20 = int_to_ptr.hbm [resolvable:$true] %s22_s20 }
   0x2   :  { %s24_s22 = sshll.u32 %s408_s21, 4  ;;  %s409_s23 = smov 128   ;;  %s25_s22 = int_to_ptr.vmem [resolvable:$true] %s24_s22 }
   0x3   :  { %s410_s24 = smov 8  }
   0x4   :  { %30 = dma.hbm_to_vmem [thread:$0]  %s23_s20, 2048, %s25_s22, [#allocation3], %s409_s23, %s409_s23, %s410_s24  }
   0x5   :  { %404 = dma.done.wait [#allocation3], 2048  }
   0x6   :  { %405 = vsyncadd [#allocation3], 4294965248  ;;  %v319_v0 = vld [vmem:[#allocation2 + $0x70] sm:$0xf]  ;;  %v346_v1 = vld [vmem:[#allocation2 + $0x74] sm:$0xf0] }
   0x7   :  { %v311_v2 = vld [vmem:[#allocation2 + $0x60] sm:$0xf]  ;;  %v320_v3 = vor.u32 %v346_v1, %v319_v0  ;;  %v344_v4 = vld [vmem:[#allocation2 + $0x64] sm:$0xf0]  ;;  %v303_v6 = vld [vmem:[#allocation2 + $0x50] sm:$0xf] }
   0x8   :  { %v312_v5 = vor.u32 %v344_v4, %v311_v2  ;;  %v342_v7 = vld [vmem:[#allocation2 + $0x54] sm:$0xf0]  ;;  %v171_v8 = vld [vmem:[%s472_s2] sm:$0xff]  ;;  %v411_v9 = vmov 0   ;;  %v345_v10 = vld [vmem:[#allocation2 + $0x74] sm:$0xf] }
   0x9   :  { %143 = vmatpush.bf16.msra.mxu0 %v320_v3  ;;  %353 = vset.pattern.permute.xlu0 %v411_v9  ;;  %v321_v11 = vld [vmem:[#allocation2 + $0x78] sm:$0xf0]  ;;  %v304_v12 = vor.u32 %v342_v7, %v303_v6  ;;  %v343_v14 = vld [vmem:[#allocation2 + $0x64] sm:$0xf]  ;;  %v313_v15 = vld [vmem:[#allocation2 + $0x68] sm:$0xf0] }
   0xa   :  { %354 = vset.pattern.permute.xlu1 %v411_v9  ;;  %175 = vperm.xlu0 %353, %v171_v8   ;;  %v324_v13 = vor.u32 %v345_v10, %v321_v11  ;;  %v295_v16 = vld [vmem:[#allocation2 + $0x40] sm:$0xf]  ;;  %v340_v17 = vld [vmem:[#allocation2 + $0x44] sm:$0xf0]  ;;  %v316_v18 = vor.u32 %v343_v14, %v313_v15  ;;  %v287_v20 = vld [vmem:[#allocation2 + $0x30] sm:$0xf] }
   0xb   :  { %216 = vperm.xlu1 %354, %v171_v8   ;;  %v296_v19 = vor.u32 %v340_v17, %v295_v16  ;;  %v338_v21 = vld [vmem:[#allocation2 + $0x34] sm:$0xf0]  ;;  %v172_v22 = vld [vmem:[%s472_s2 + $0x8] sm:$0xff]  ;;  %v279_v24 = vld [vmem:[#allocation2 + $0x20] sm:$0xf]  ;;  %vm193_vm0 = vcmask 130048  }
   0xc   :  { %157 = vmatpush.bf16.msra.mxu1 %v324_v13  ;;  %v288_v23 = vor.u32 %v338_v21, %v287_v20  ;;  %v336_v25 = vld [vmem:[#allocation2 + $0x24] sm:$0xf0]  ;;  %v271_v27 = vld [vmem:[#allocation2 + $0x10] sm:$0xf]  ;;  %v334_v28 = vld [vmem:[#allocation2 + $0x14] sm:$0xf0] }
   0xd   :  { %144 = vmatpush.bf16.msra.mxu0 %v312_v5  ;;  %v280_v26 = vor.u32 %v336_v25, %v279_v24  ;;  %v272_v29 = vor.u32 %v334_v28, %v271_v27  ;;  %v263_v30 = vld [vmem:[#allocation2] sm:$0xf]  ;;  %v332_v31 = vld [vmem:[#allocation2 + $0x4] sm:$0xf0]  ;;  %v341_v34 = vld [vmem:[#allocation2 + $0x54] sm:$0xf] }
   0xe   :  { %v264_v32 = vor.u32 %v332_v31, %v263_v30  ;;  %v330_v33 = vld [vmem:[%s471_s1] sm:$0xff]  ;;  %v305_v35 = vld [vmem:[#allocation2 + $0x58] sm:$0xf0]  ;;  %v297_v38 = vld [vmem:[#allocation2 + $0x48] sm:$0xf0]  ;;  %s244_s10 = sshll.u32 %s475_s5, 4  ;;  %s245_s10 = int_to_ptr.hbm [resolvable:$true] %s244_s10 }
   0xf   :  { %v339_v36 = vld [vmem:[#allocation2 + $0x44] sm:$0xf]  ;;  %v308_v37 = vor.u32 %v341_v34, %v305_v35  ;;  %v337_v40 = vld [vmem:[#allocation2 + $0x34] sm:$0xf]  ;;  %v289_v41 = vld [vmem:[#allocation2 + $0x38] sm:$0xf0] }
  0x10   :  { %158 = vmatpush.bf16.msra.mxu1 %v316_v18  ;;  %v300_v39 = vor.u32 %v339_v36, %v297_v38  ;;  %v292_v42 = vor.u32 %v337_v40, %v289_v41  ;;  %v335_v43 = vld [vmem:[#allocation2 + $0x24] sm:$0xf]  ;;  %v281_v44 = vld [vmem:[#allocation2 + $0x28] sm:$0xf0]  ;;  %v333_v46 = vld [vmem:[#allocation2 + $0x14] sm:$0xf] }
  0x11   :  { %145 = vmatpush.bf16.msra.mxu0 %v304_v12  ;;  %v284_v45 = vor.u32 %v335_v43, %v281_v44  ;;  %v273_v47 = vld [vmem:[#allocation2 + $0x18] sm:$0xf0]  ;;  %v331_v49 = vld [vmem:[#allocation2 + $0x4] sm:$0xf]  ;;  %v265_v50 = vld [vmem:[#allocation2 + $0x8] sm:$0xf0] }
  0x12   :  { %180 = vperm.xlu0 %353, %v172_v22   ;;  %v276_v48 = vor.u32 %v333_v46, %v273_v47  ;;  %v268_v51 = vor.u32 %v331_v49, %v265_v50  ;;  %v347_v59 = vld [vmem:[%s470_s0] sm:$0xff]  ;;  %s412_s0 = smov [#allocation5]  }
  0x13   :  { %221 = vperm.xlu1 %354, %v172_v22   ;;  %v355_v0 = vld [vmem:[%s474_s4] ss:$0 sm:$0xff]  ;;  %s242_s7 = sshll.u32 %s412_s0, 4  ;;  %s243_s7 = int_to_ptr.vmem [resolvable:$true] %s242_s7 }
  0x14   :  { %159 = vmatpush.bf16.msra.mxu1 %v308_v37 }
  0x15   :  { %146 = vmatpush.bf16.msra.mxu0 %v296_v19 }
  0x18   :  { %160 = vmatpush.bf16.msra.mxu1 %v300_v39 }
  0x19   :  { %147 = vmatpush.bf16.msra.mxu0 %v288_v23 }
  0x1c   :  { %161 = vmatpush.bf16.msra.mxu1 %v292_v42 }
  0x1d   :  { %148 = vmatpush.bf16.msra.mxu0 %v280_v26 }
  0x20   :  { %162 = vmatpush.bf16.msra.mxu1 %v284_v45 }
  0x21   :  { %149 = vmatpush.bf16.msra.mxu0 %v272_v29 }
  0x24   :  { %163 = vmatpush.bf16.msra.mxu1 %v276_v48 }
  0x25   :  { %150 = vmatpush.bf16.msra.mxu0 %v264_v32 }
  0x28   :  { %151 = vmatmul.bf16.vlgmr.msra.gmra.mxu0 %v330_v33  ;;  %164 = vmatpush.bf16.msra.mxu1 %v268_v51 }
  0x2b   :  { %165 = vmatmul.bf16.vlgmr.msra.gmra.mxu1 %v330_v33 }
  0x7c   :  { %v176_v52 = vpop.permute.xlu0 %175 }
  0x7d   :  { %v217_v60 = vpop.permute.xlu1 %216 }
  0x84   :  { %v181_v54 = vpop.permute.xlu0 %180 }
  0x85   :  { %v222_v4 = vpop.permute.xlu1 %221 }
  0xa5   :  { %v152_v53 = vpop.f32.mrf.mxu0 }
  0xa6   :  { %v183_v56 = vmul.f32 %v176_v52, %v152_v53 }
  0xa8   :  { %v166_v61 = vpop.f32.mrf.mxu1 }
  0xad   :  { %v154_v55 = vpop.f32.mrf.mxu0 }
  0xae   :  { %v184_v57 = vmul.f32 %v181_v54, %v154_v55 }
  0xb0   :  { %v185_v58 = vpack.c.bf16 %v184_v57, %v183_v56  ;;  %v168_v7 = vpop.f32.mrf.mxu1 }
  0xb2   :  { %204 = vmatpush.bf16.msra.mxu2 %v185_v58 }
  0xb5   :  { %329 = vmatmul.msk.bf16.vlgmr.msra.gmra.mxu2 %vm193_vm0, %v347_v59 }
 0x138   :  { %v206_v62 = vpop.f32.mrf.mxu2 }
 0x139   :  { %v224_v63 = vmul.f32 %v217_v60, %v206_v62 }
 0x13b   :  { %v226_v1 = vadd.f32 %v224_v63, %v166_v61 }
 0x13d   :  { %v232_v2 = vadd.f32 %v355_v0, %v226_v1 }
 0x13f   :  { %v234_v3 = vmax.f32 %v232_v2, 0.0 }
 0x140   :  { %v208_v5 = vpop.f32.mrf.mxu2 }
 0x141   :  { %236 = vst [vmem:[#allocation5] sm:$0xff] %v234_v3  ;;  %v225_v6 = vmul.f32 %v222_v4, %v208_v5 }
 0x143   :  { %v227_v8 = vadd.f32 %v225_v6, %v168_v7 }
 0x145   :  { %v233_v9 = vadd.f32 %v355_v0, %v227_v8 }
 0x147   :  { %v235_v10 = vmax.f32 %v233_v9, 0.0 }
 0x149   :  { %237 = vst [vmem:[#allocation5 + $0x8] sm:$0xff] %v235_v10 }
 0x14a   :  { %250 = dma.vmem_to_hbm [thread:$0]  %s243_s7, 256, %s245_s10, [#allocation4], %s409_s23, %s409_s23, %s410_s24  }
 0x14b   :  { %406 = dma.done.wait [#allocation4], 256  }
 0x14c   :  { %407 = vsyncadd [#allocation4], 4294967040 }
 0x14d   :  { %255 = vsyncpa [#allocation3], 1 }
 0x14e   :  { %256 = vsyncpa [#allocation4], 1 }

</bundles_post_ra>
